<compile_context>
chip_gen: v7x
topology: tpu7x:2x2x1
jax: 0.10.0
libtpu: 0.0.40
codegen_flags: <defaults>
</compile_context>

<pallas_src>
import functools

import jax
import jax.numpy as jnp
from jax.experimental import pallas as pl
from jax.experimental.pallas import tpu as pltpu

_HIGH = jax.lax.Precision.HIGHEST


def critic_kernel(obs_ref, mask_ref, w1_ref, w2_ref, const_ref, out_ref):
    obs_dim = obs_ref.shape[1]
    two_f = w1_ref.shape[0]
    h1_dim = w1_ref.shape[1]
    h2_dim = w2_ref.shape[1]

    # Streamed activations (accept bf16/f32 producers; compute in f32).
    x_obs = obs_ref[...].astype(jnp.float32)          # [TB, obs_dim]
    x_msk = mask_ref[...].astype(jnp.float32)          # [TB, obs_dim]

    # Packed resident constants: row 0 = b1, row 1 = b2, row 2 = w3, row 3[0] = b3.
    b1 = const_ref[0:1, :h1_dim]                        # [1, H1]
    b2 = const_ref[1:2, :h2_dim]                        # [1, H2]
    w3 = const_ref[2:3, :h2_dim]                        # [1, H2]
    b3 = const_ref[3:4, 0:1]                            # [1, 1]

    # Layer 1: split-W1 form of Linear(cat([obs, mask])) -- no lane concat, pure MXU.
    h1 = jnp.dot(x_obs, w1_ref[0:obs_dim, :],
                 preferred_element_type=jnp.float32, precision=_HIGH)
    h1 = h1 + jnp.dot(x_msk, w1_ref[obs_dim:two_f, :],
                      preferred_element_type=jnp.float32, precision=_HIGH)
    h1 = jnp.maximum(h1 + b1, 0.0)                      # [TB, H1] f32

    # Layer 2: Linear + ReLU.
    h2 = jnp.dot(h1, w2_ref[...],
                 preferred_element_type=jnp.float32, precision=_HIGH)
    h2 = jnp.maximum(h2 + b2, 0.0)                      # [TB, H2] f32

    # Head Linear(H2, 1): MXU contraction over H2, transposed output -> lane-dense row.
    #   v[1, TB] = w3[1, H2] . h2[TB, H2]^T
    v = jax.lax.dot_general(w3, h2, (((1,), (1,)), ((), ())),
                            preferred_element_type=jnp.float32, precision=_HIGH)
    out_ref[...] = v + b3                                # [1, TB] unmasked lane-dense store


def _choose_batch_tile(batch, cap):
    """Adaptive batch tile: whole batch for small B, else a multiple of 128 <= cap,
    with >=2 grid steps (v7x megacore) whenever B >= 256."""
    cap = max(128, (cap // 128) * 128)
    if batch < 256:
        return batch, 1
    n_tiles = max(2, pl.cdiv(batch, cap))
    block_b = pl.cdiv(batch, n_tiles)
    block_b = min(((block_b + 127) // 128) * 128, cap)
    n_tiles = pl.cdiv(batch, block_b)
    return block_b, n_tiles


def con_p_obs_critic_forward(observed, mask, params, *, block_b_cap=4096):
    """Fused critic MLP. observed/mask: [B, obs_dim]. Returns values of shape [B] (f32)."""
    B, obs_dim = observed.shape
    w1, b1, w2, b2, w3, b3 = params
    assert w1.shape[0] == 2 * obs_dim, "w1 must have 2*obs_dim input rows"
    h1_dim, h2_dim = w1.shape[1], w2.shape[1]

    # Pack b1/b2/w3/b3 into one small lane-dense resident block (fewer prologue DMAs).
    pack_w = max(128, ((max(h1_dim, h2_dim) + 127) // 128) * 128)
    const = jnp.zeros((8, pack_w), jnp.float32)
    const = const.at[0, :h1_dim].set(b1.reshape(-1).astype(jnp.float32))
    const = const.at[1, :h2_dim].set(b2.reshape(-1).astype(jnp.float32))
    const = const.at[2, :h2_dim].set(w3.reshape(-1).astype(jnp.float32))
    const = const.at[3, 0].set(b3.reshape(-1)[0].astype(jnp.float32))

    block_b, n_tiles = _choose_batch_tile(B, block_b_cap)

    batch_spec = pl.BlockSpec((block_b, obs_dim), lambda i: (i, 0))

    def resident(shape):
        # Whole-array block with a constant index_map: loaded once, stays in VMEM.
        return pl.BlockSpec(shape, lambda i: (0, 0))

    out = pl.pallas_call(
        critic_kernel,
        out_shape=jax.ShapeDtypeStruct((1, B), jnp.float32),
        grid=(n_tiles,),
        in_specs=[
            batch_spec,                        # observed  [B, obs_dim]  (streamed)
            batch_spec,                        # mask      [B, obs_dim]  (streamed)
            resident((2 * obs_dim, h1_dim)),   # w1 (whole; sliced statically in-kernel)
            resident((h1_dim, h2_dim)),        # w2
            resident((8, pack_w)),             # packed b1/b2/w3/b3
        ],
        out_specs=pl.BlockSpec((1, block_b), lambda i: (0, i)),
        compiler_params=pltpu.CompilerParams(
            dimension_semantics=("parallel",)),
    )(observed, mask, w1.astype(jnp.float32), w2.astype(jnp.float32), const)

    # squeeze(dim=1) semantics (the kernel already produced the transposed row).
    return out[0]


def init_params(key, embed_dim, hidden_dims, out_dim=1):
    """Deterministic Linear params (PyTorch-style uniform fan-in init), [in, out] layout."""
    dims = [embed_dim] + list(hidden_dims) + [out_dim]
    params = []
    for fan_in, fan_out in zip(dims[:-1], dims[1:]):
        key, kw, kb = jax.random.split(key, 3)
        bound = 1.0 / (fan_in ** 0.5)
        w = jax.random.uniform(kw, (fan_in, fan_out), jnp.float32, -bound, bound)
        b = jax.random.uniform(kb, (fan_out,), jnp.float32, -bound, bound)
        params += [w, b]
    return tuple(params)


def reference_forward(observed, mask, params):
    """Pure-JAX f32 reference of the same MLP (ReLU hidden activations)."""
    w1, b1, w2, b2, w3, b3 = params
    embed = jnp.concatenate([observed, mask], axis=1)
    h = jnp.maximum(jnp.dot(embed, w1, precision=_HIGH) + b1, 0.0)
    h = jnp.maximum(jnp.dot(h, w2, precision=_HIGH) + b2, 0.0)
    v = jnp.dot(h, w3, precision=_HIGH) + b3
    return v[:, 0]


if __name__ == "__main__":
    # Shapes implied by the module: obs_dim=16 -> embed_dim=32, critic_layers=(32, 32).
    OBS_DIM = 16
    EMBED_DIM = 2 * OBS_DIM
    CRITIC_LAYERS = (32, 32)

    key = jax.random.PRNGKey(0)
    k_params, k_small, k_big = jax.random.split(key, 3)
    params = init_params(k_params, EMBED_DIM, CRITIC_LAYERS, out_dim=1)

    fwd = jax.jit(functools.partial(con_p_obs_critic_forward, block_b_cap=4096))

    # Small batch (single whole-batch tile) and a larger batch (multi-tile, parallel grid).
    for B, kk in ((8, k_small), (512, k_big)):
        k_obs, k_mask = jax.random.split(kk)
        observed = jax.random.normal(k_obs, (B, OBS_DIM), jnp.float32)
        # mask is a 0/1 indicator of observed entries.
        mask = (jax.random.uniform(k_mask, (B, OBS_DIM)) > 0.5).astype(jnp.float32)

        values = jax.block_until_ready(fwd(observed, mask, params))
        ref = reference_forward(observed, mask, params)

        assert values.shape == (B,), (values.shape, B)
        # f32 matmul operands on both sides -> tight tolerance (PyTorch f32 parity).
        assert jnp.allclose(values, ref, atol=5e-4, rtol=5e-4), (B, values, ref)

    print("KERNEL_OK")
</pallas_src>

<mosaic_0001>
module attributes {stable_mosaic.version = 11 : i64} {
  func.func @critic_kernel(%arg0: i32, %arg1: memref<8x16xf32, #tpu.memory_space<vmem>>, %arg2: memref<8x16xf32, #tpu.memory_space<vmem>>, %arg3: memref<32x32xf32, #tpu.memory_space<vmem>>, %arg4: memref<32x32xf32, #tpu.memory_space<vmem>>, %arg5: memref<8x128xf32, #tpu.memory_space<vmem>>, %arg6: memref<1x8xf32, #tpu.memory_space<vmem>>) attributes {dimension_semantics = [#tpu.dimension_semantics<parallel>], iteration_bounds = array<i64: 1>, scalar_prefetch = 0 : i64, scratch_operands = 0 : i64, tpu.core_type = #tpu.core_type<tc>, window_params = [{transform_indices = @transform_0, window_bounds = array<i64: 8, 16>}, {transform_indices = @transform_1, window_bounds = array<i64: 8, 16>}, {pipeline_mode = #tpu.pipeline_mode<synchronous>, transform_indices = @transform_2, window_bounds = array<i64: 32, 32>}, {pipeline_mode = #tpu.pipeline_mode<synchronous>, transform_indices = @transform_3, window_bounds = array<i64: 32, 32>}, {pipeline_mode = #tpu.pipeline_mode<synchronous>, transform_indices = @transform_4, window_bounds = array<i64: 8, 128>}, {transform_indices = @transform_5, window_bounds = array<i64: 1, 8>}]} {
    %c0 = arith.constant 0 : index
    %c0_0 = arith.constant 0 : index
    %0 = vector.load %arg1[%c0, %c0_0] : memref<8x16xf32, #tpu.memory_space<vmem>>, vector<8x16xf32>
    %c0_1 = arith.constant 0 : index
    %c0_2 = arith.constant 0 : index
    %1 = vector.load %arg2[%c0_1, %c0_2] : memref<8x16xf32, #tpu.memory_space<vmem>>, vector<8x16xf32>
    %c0_3 = arith.constant 0 : index
    %c0_4 = arith.constant 0 : index
    %2 = vector.load %arg5[%c0_3, %c0_4] : memref<8x128xf32, #tpu.memory_space<vmem>>, vector<1x32xf32>
    %c1 = arith.constant 1 : index
    %c0_5 = arith.constant 0 : index
    %3 = vector.load %arg5[%c1, %c0_5] : memref<8x128xf32, #tpu.memory_space<vmem>>, vector<1x32xf32>
    %c2 = arith.constant 2 : index
    %c0_6 = arith.constant 0 : index
    %4 = vector.load %arg5[%c2, %c0_6] : memref<8x128xf32, #tpu.memory_space<vmem>>, vector<1x32xf32>
    %c3 = arith.constant 3 : index
    %c0_7 = arith.constant 0 : index
    %5 = vector.load %arg5[%c3, %c0_7] : memref<8x128xf32, #tpu.memory_space<vmem>>, vector<1x1xf32>
    %c0_8 = arith.constant 0 : index
    %c0_9 = arith.constant 0 : index
    %6 = vector.load %arg3[%c0_8, %c0_9] : memref<32x32xf32, #tpu.memory_space<vmem>>, vector<16x32xf32>
    %cst = arith.constant dense<0.000000e+00> : vector<8x32xf32>
    %7 = tpu.matmul %0, %6, %cst {dimension_numbers = #tpu.dot_dimension_numbers<[1], [0], [0], [1], [0, 0, 1, 1], [], []>, precision = #tpu.contract_precision<fp32>} : vector<8x16xf32>, vector<16x32xf32>, vector<8x32xf32> -> vector<8x32xf32>
    %c16 = arith.constant 16 : index
    %c0_10 = arith.constant 0 : index
    %8 = vector.load %arg3[%c16, %c0_10] : memref<32x32xf32, #tpu.memory_space<vmem>>, vector<16x32xf32>
    %cst_11 = arith.constant dense<0.000000e+00> : vector<8x32xf32>
    %9 = tpu.matmul %1, %8, %cst_11 {dimension_numbers = #tpu.dot_dimension_numbers<[1], [0], [0], [1], [0, 0, 1, 1], [], []>, precision = #tpu.contract_precision<fp32>} : vector<8x16xf32>, vector<16x32xf32>, vector<8x32xf32> -> vector<8x32xf32>
    %10 = arith.addf %7, %9 : vector<8x32xf32>
    %11 = vector.broadcast %2 : vector<1x32xf32> to vector<8x32xf32>
    %12 = arith.addf %10, %11 : vector<8x32xf32>
    %cst_12 = arith.constant 0.000000e+00 : f32
    %13 = vector.broadcast %cst_12 : f32 to vector<8x32xf32>
    %14 = arith.maximumf %12, %13 : vector<8x32xf32>
    %c0_13 = arith.constant 0 : index
    %c0_14 = arith.constant 0 : index
    %15 = vector.load %arg4[%c0_13, %c0_14] : memref<32x32xf32, #tpu.memory_space<vmem>>, vector<32x32xf32>
    %cst_15 = arith.constant dense<0.000000e+00> : vector<8x32xf32>
    %16 = tpu.matmul %14, %15, %cst_15 {dimension_numbers = #tpu.dot_dimension_numbers<[1], [0], [0], [1], [0, 0, 1, 1], [], []>, precision = #tpu.contract_precision<fp32>} : vector<8x32xf32>, vector<32x32xf32>, vector<8x32xf32> -> vector<8x32xf32>
    %17 = vector.broadcast %3 : vector<1x32xf32> to vector<8x32xf32>
    %18 = arith.addf %16, %17 : vector<8x32xf32>
    %cst_16 = arith.constant 0.000000e+00 : f32
    %19 = vector.broadcast %cst_16 : f32 to vector<8x32xf32>
    %20 = arith.maximumf %18, %19 : vector<8x32xf32>
    %cst_17 = arith.constant dense<0.000000e+00> : vector<1x8xf32>
    %21 = tpu.matmul %4, %20, %cst_17 {dimension_numbers = #tpu.dot_dimension_numbers<[1], [1], [0], [0], [0, 0, 1, 0], [], []>, precision = #tpu.contract_precision<fp32>} : vector<1x32xf32>, vector<8x32xf32>, vector<1x8xf32> -> vector<1x8xf32>
    %22 = vector.broadcast %5 : vector<1x1xf32> to vector<1x8xf32>
    %23 = arith.addf %21, %22 : vector<1x8xf32>
    %c0_18 = arith.constant 0 : index
    %c0_19 = arith.constant 0 : index
    %24 = vector.load %arg6[%c0_18, %c0_19] : memref<1x8xf32, #tpu.memory_space<vmem>>, vector<1x8xf32>
    tpu.vector_store %arg6[%c0_18, %c0_19], %23 {strides = array<i32>} : memref<1x8xf32, #tpu.memory_space<vmem>>, vector<1x8xf32>,
    return
  }
  func.func @transform_0(%arg0: i32) -> (i32, i32) {
    %c0_i32 = arith.constant 0 : i32
    %c0_i32_0 = arith.constant 0 : i32
    return %arg0, %c0_i32 : i32, i32
  }
  func.func @transform_1(%arg0: i32) -> (i32, i32) {
    %c0_i32 = arith.constant 0 : i32
    %c0_i32_0 = arith.constant 0 : i32
    return %arg0, %c0_i32 : i32, i32
  }
  func.func @transform_2(%arg0: i32) -> (i32, i32) {
    %c0_i32 = arith.constant 0 : i32
    %c0_i32_0 = arith.constant 0 : i32
    %c0_i32_1 = arith.constant 0 : i32
    return %c0_i32, %c0_i32_0 : i32, i32
  }
  func.func @transform_3(%arg0: i32) -> (i32, i32) {
    %c0_i32 = arith.constant 0 : i32
    %c0_i32_0 = arith.constant 0 : i32
    %c0_i32_1 = arith.constant 0 : i32
    return %c0_i32, %c0_i32_0 : i32, i32
  }
  func.func @transform_4(%arg0: i32) -> (i32, i32) {
    %c0_i32 = arith.constant 0 : i32
    %c0_i32_0 = arith.constant 0 : i32
    %c0_i32_1 = arith.constant 0 : i32
    return %c0_i32, %c0_i32_0 : i32, i32
  }
  func.func @transform_5(%arg0: i32) -> (i32, i32) {
    %c0_i32 = arith.constant 0 : i32
    %c0_i32_0 = arith.constant 0 : i32
    return %c0_i32, %arg0 : i32, i32
  }
}

</mosaic_0001>

<bundles_post_ra>
// kernel: con_p_obs_critic_forward.1
= control target key start
LH: loop header
LB: loop body
LE: loop exit
PB: predicated region body
PF: predicated region fallthrough
CT: control target
= control target key end

     0   :  { %10 = vsyncpa [#allocation3], 0  ;;  %s2575_s0 = inlined_call_operand.vmem [shape: f32[8,16], index: 0, kind: input, shape index: {}]   ;;  %s2576_s1 = inlined_call_operand.vmem [shape: f32[8,16], index: 1, kind: input, shape index: {}]   ;;  %s2577_s2 = inlined_call_operand.vmem [shape: f32[32,32], index: 2, kind: input, shape index: {}]   ;;  %s2578_s3 = inlined_call_operand.hbm [shape: f32[32,32], index: 3, kind: input, shape index: {}]   ;;  %s2579_s4 = inlined_call_operand.vmem [shape: f32[8,128], index: 4, kind: input, shape index: {}]   ;;  %s2580_s5 = inlined_call_operand.hbm [shape: f32[1,8], index: 5, kind: output, shape index: {}]  }
   0x1   :  { %11 = vsyncpa [#allocation4], 0  ;;  %s2358_s18 = smov [#allocation2]   ;;  %s2310_s22 = scalar_lea.hbm %s2578_s3, 512 }
   0x2   :  { %s23_s19 = sshll.u32 %s2358_s18, 4  ;;  %p2311_p0 = scmp.ne.s32.totalorder %s2578_s3, %s2310_s22  ;;  %s24_s19 = int_to_ptr.vmem [resolvable:$true] %s23_s19 }
   0x3   :  { %p2314_p1 = scmp.lt.u32.totalorder %s2310_s22, %s2578_s3 }
   0x5   :  { %p2316_p2 = pnand %p2314_p1, %p2311_p0 }
   0x7   :  { %2319 = shalt.err (!%p2316_p2)
}
   0x8   :  { %s2320_s27 = scalar_lea.vmem %s24_s19, 512  ;;  %p2325_p4 = scmp.lt.s32.totalorder %s24_s19, %s24_s19 }
   0x9   :  { %p2321_p3 = scmp.ne.s32.totalorder %s24_s19, %s2320_s27  ;;  %p2326_p5 = scmp.lt.s32.totalorder %s2320_s27, %s2320_s27 }
   0xb   :  { %p2327_p6 = por %p2326_p5, %p2325_p4 }
   0xd   :  { %p2328_p7 = pnand %p2327_p6, %p2321_p3 }
   0xf   :  { %2331 = shalt.err (!%p2328_p7)
}
  0x10   :  { %s2359_s28 = smov 128   ;;  %s2360_s29 = smov 8  }
  0x11   :  { %29 = dma.hbm_to_vmem [thread:$0]  %s2578_s3, 512, %s24_s19, [#allocation3], %s2359_s28, %s2359_s28, %s2360_s29  }
  0x12   :  { %2354 = dma.done.wait [#allocation3], 512  }
  0x13   :  { %2355 = vsyncadd [#allocation3], 4294966784  ;;  %v2361_v0 = vmov 0.0|0.0   ;;  %vm2362_vm0 = vmmov 0   ;;  %v2363_v1 = vmov 0.0   ;;  %vm45_vm1 = vcmask 130048  }
  0x14   :  { %2208 = vmatprep.subr.bf16.mxu1 %v2361_v0  ;;  %2032 = vmatprep.mubr.msk.f32.mxu1 %vm2362_vm0, %v2363_v1  ;;  %v43_v2 = vld [vmem:[%s2577_s2 + $0x10] sm:$0xff]  ;;  %v44_v3 = vld [vmem:[%s2577_s2 + $0x18] sm:$0xff]  ;;  %v35_v4 = vld [vmem:[%s2575_s0] sm:$0xff]  ;;  %vm984_vm2 = vcmask 261120   ;;  %vm1931_vm3 = vcmask 57344  }
  0x15   :  { %2214 = vmatprep.subr.bf16.mxu0 %v2361_v0  ;;  %2046 = vmatprep.mubr.msk.f32.mxu0 %vm2362_vm0, %v2363_v1  ;;  %v50_v5 = vand.u32 4294901760, %v43_v2  ;;  %v53_v6 = vand.u32 4294901760, %v44_v3  ;;  %v36_v7 = vld [vmem:[%s2576_s1] sm:$0xff]  ;;  %v509_v8 = vsel %vm45_vm1, %v35_v4, 0  ;;  %v42_v10 = vld [vmem:[%s2577_s2 + $0x8] sm:$0xff]  ;;  %v978_v54 = vld [vmem:[#allocation2 + $0x10] sm:$0xff] }
  0x16   :  { %v41_v9 = vld [vmem:[%s2577_s2] sm:$0xff]  ;;  %v47_v11 = vsel %vm45_vm1, %v36_v7, 0  ;;  %v2432_v12 = vand.u32 4294901760, %v509_v8  ;;  %v515_v14 = vand.u32 4294901760, %v42_v10  ;;  %v977_v49 = vld [vmem:[#allocation2 + $0x8] sm:$0xff]  ;;  %v979_v55 = vld [vmem:[#allocation2 + $0x18] sm:$0xff] }
  0x17   :  { %v512_v13 = vand.u32 4294901760, %v41_v9  ;;  %v2209_v15 = vpack.c.bf16 %v53_v6, %v50_v5  ;;  %v128_v16 = vsub.f32 %v43_v2, %v50_v5  ;;  %v135_v17 = vsub.f32 %v44_v3, %v53_v6  ;;  %v976_v48 = vld [vmem:[#allocation2] sm:$0xff] }
  0x18   :  { %v116_v18 = vand.u32 4294901760, %v47_v11  ;;  %v2435_v19 = vsub.f32 %v509_v8, %v2432_v12  ;;  %v597_v25 = vsub.f32 %v42_v10, %v515_v14  ;;  %v989_v50 = vand.u32 4294901760, %v976_v48 }
  0x19   :  { %2210 = vmatpush3.bf16.msra.mxu1 %v2209_v15  ;;  %v129_v21 = vand.u32 4294901760, %v128_v16  ;;  %v136_v22 = vand.u32 4294901760, %v135_v17  ;;  %v2215_v23 = vpack.c.bf16 %v135_v17, %v128_v16  ;;  %v590_v24 = vsub.f32 %v41_v9, %v512_v13 }
  0x1a   :  { %v117_v20 = vsub.f32 %v47_v11, %v116_v18  ;;  %2211 = vmatprep.subr.bf16.mxu1 %v2361_v0  ;;  %v580_v26 = vand.u32 4294901760, %v2435_v19  ;;  %v598_v35 = vand.u32 4294901760, %v597_v25  ;;  %v2227_v39 = vpack.c.bf16 %v515_v14, %v512_v13 }
  0x1b   :  { %v130_v28 = vsub.f32 %v128_v16, %v129_v21  ;;  %v137_v29 = vsub.f32 %v135_v17, %v136_v22  ;;  %2216 = vmatpush3.bf16.msra.mxu0 %v2215_v23  ;;  %v2221_v30 = vpack.c.bf16 %v136_v22, %v129_v21  ;;  %v591_v34 = vand.u32 4294901760, %v590_v24 }
  0x1c   :  { %v118_v27 = vand.u32 4294901760, %v117_v20  ;;  %2220 = vmatprep.subr.bf16.mxu0 %v2361_v0  ;;  %v581_v38 = vsub.f32 %v2435_v19, %v580_v26  ;;  %v599_v41 = vsub.f32 %v597_v25, %v598_v35  ;;  %v2233_v43 = vpack.c.bf16 %v597_v25, %v590_v24 }
  0x1d   :  { %v131_v32 = vand.u32 4294901760, %v130_v28  ;;  %v138_v33 = vand.u32 4294901760, %v137_v29  ;;  %v592_v40 = vsub.f32 %v590_v24, %v591_v34  ;;  %v2239_v46 = vpack.c.bf16 %v598_v35, %v591_v34 }
  0x1e   :  { %v119_v31 = vsub.f32 %v117_v20, %v118_v27  ;;  %2047 = vmatmul.mubr.f32.vlgmr.msra.gmra.mrb[0].mxu0 %v117_v20  ;;  %v582_v42 = vand.u32 4294901760, %v581_v38  ;;  %v600_v45 = vand.u32 4294901760, %v599_v41  ;;  %v992_v51 = vand.u32 4294901760, %v977_v49 }
  0x1f   :  { %v2212_v37 = vpack.c.bf16 %v138_v33, %v131_v32  ;;  %2222 = vmatpush3.bf16.msra.mxu0 %v2221_v30  ;;  %2060 = vmatprep.mubr.msk.f32.mxu0 %vm2362_vm0, %v2363_v1  ;;  %v593_v44 = vand.u32 4294901760, %v592_v40  ;;  %v2479_v52 = vsub.f32 %v976_v48, %v989_v50  ;;  %v995_v58 = vand.u32 4294901760, %v978_v54 }
  0x20   :  { %v120_v36 = vand.u32 4294901760, %v119_v31  ;;  %2226 = vmatprep.subr.bf16.mxu0 %v2361_v0  ;;  %v2481_v53 = vsub.f32 %v977_v49, %v992_v51  ;;  %v998_v59 = vand.u32 4294901760, %v979_v55 }
  0x21   :  { %v2230_v47 = vpack.c.bf16 %v600_v45, %v593_v44  ;;  %v1070_v56 = vand.u32 4294901760, %v2479_v52  ;;  %v2487_v62 = vsub.f32 %v978_v54, %v995_v58 }
  0x22   :  { %2033 = vmatmul.mubr.f32.vlgmr.msra.gmra.mrb[0].mxu1 %v120_v36  ;;  %2061 = vmatmul.mubr.f32.vlgmr.msra.gmra.mrb[2].mxu0 %v116_v18  ;;  %v1077_v57 = vand.u32 4294901760, %v2481_v53  ;;  %v2489_v63 = vsub.f32 %v979_v55, %v998_v59  ;;  %v2257_v13 = vpack.c.bf16 %v2481_v53, %v2479_v52  ;;  %v2503_v14 = vpack.c.bf16 %v998_v59, %v995_v58 }
  0x23   :  { %2213 = vmatpush3.bf16.msra.mxu1 %v2212_v37  ;;  %2039 = vmatprep.mubr.msk.f32.mxu1 %vm2362_vm0, %v2363_v1  ;;  %v1071_v60 = vsub.f32 %v2479_v52, %v1070_v56  ;;  %v1084_v4 = vand.u32 4294901760, %v2487_v62 }
  0x24   :  { %2217 = vmatprep.subr.bf16.mxu1 %v2361_v0  ;;  %2228 = vmatpush3.bf16.msra.mxu0 %v2227_v39  ;;  %v1078_v61 = vsub.f32 %v2481_v53, %v1077_v57  ;;  %v1091_v5 = vand.u32 4294901760, %v2489_v63  ;;  %v2269_v16 = vpack.c.bf16 %v1077_v57, %v1070_v56 }
  0x25   :  { %2074 = vmatprep.mubr.msk.f32.mxu0 %vm2362_vm0, %v2363_v1  ;;  %2232 = vmatprep.subr.bf16.mxu0 %v2361_v0  ;;  %v1072_v2 = vand.u32 4294901760, %v1071_v60  ;;  %v1085_v7 = vsub.f32 %v2487_v62, %v1084_v4 }
  0x26   :  { %2040 = vmatmul.mubr.f32.vlgmr.msra.gmra.mrb[2].mxu1 %v116_v18  ;;  %v1079_v3 = vand.u32 4294901760, %v1078_v61  ;;  %v1092_v8 = vsub.f32 %v2489_v63, %v1091_v5  ;;  %v2509_v17 = vpack.c.bf16 %v1091_v5, %v1084_v4  ;;  %v39_v4 = vld [vmem:[%s2579_s4 + $0x2] sm:$0x1] }
  0x27   :  { %2219 = vmatpush3.bf16.msra.mxu1 %v2209_v15  ;;  %2053 = vmatprep.mubr.msk.f32.mxu1 %vm2362_vm0, %v2363_v1  ;;  %v1086_v9 = vand.u32 4294901760, %v1085_v7  ;;  %v1480_v5 = vsel %vm984_vm2, %v39_v4, 0  ;;  %v1949_v7 = vld [vmem:[%s2579_s4 + $0x1] ss:$0 sm:$0xff] }
  0x28   :  { %2223 = vmatprep.subr.bf16.mxu1 %v2361_v0  ;;  %2075 = vmatmul.mubr.f32.vlgmr.msra.gmra.mrb[4].mxu0 %v582_v42  ;;  %v2251_v6 = vpack.c.bf16 %v1079_v3, %v1072_v2  ;;  %v1093_v10 = vand.u32 4294901760, %v1092_v8 }
  0x29   :  { %2234 = vmatpush3.bf16.msra.mxu0 %v2233_v43  ;;  %2088 = vmatprep.mubr.msk.f32.mxu0 %vm2362_vm0, %v2363_v1 }
  0x2a   :  { %2054 = vmatmul.mubr.f32.vlgmr.msra.gmra.mrb[4].mxu1 %v118_v27  ;;  %2238 = vmatprep.subr.bf16.mxu0 %v2361_v0  ;;  %v2254_v11 = vpack.c.bf16 %v1093_v10, %v1086_v9 }
  0x2b   :  { %2225 = vmatpush3.bf16.msra.mxu1 %v2209_v15  ;;  %2067 = vmatprep.mubr.msk.f32.mxu1 %vm2362_vm0, %v2363_v1  ;;  %v2260_v15 = vpack.c.bf16 %v2489_v63, %v2487_v62  ;;  %v40_v62 = vld [vmem:[%s2579_s4 + $0x3] sm:$0x1]  ;;  %v2364_v63 = vmov 0  }
  0x2c   :  { %2229 = vmatprep.subr.bf16.mxu1 %v2361_v0  ;;  %2089 = vmatmul.mubr.f32.vlgmr.msra.gmra.mrb[6].mxu0 %v2435_v19 }
  0x2d   :  { %2240 = vmatpush3.bf16.msra.mxu0 %v2239_v46  ;;  %2102 = vmatprep.mubr.msk.f32.mxu0 %vm2362_vm0, %v2363_v1 }
  0x2e   :  { %2068 = vmatmul.mubr.f32.vlgmr.msra.gmra.mrb[6].mxu1 %v116_v18  ;;  %2250 = vmatprep.subr.bf16.mxu0 %v2361_v0 }
  0x2f   :  { %2231 = vmatpush3.bf16.msra.mxu1 %v2230_v47  ;;  %2081 = vmatprep.mubr.msk.f32.mxu1 %vm2362_vm0, %v2363_v1 }
  0x30   :  { %2235 = vmatprep.subr.bf16.mxu1 %v2361_v0  ;;  %2103 = vmatmul.mubr.f32.vlgmr.msra.gmra.mrb[8].mxu0 %v2432_v12 }
  0x31   :  { %2131 = vmatprep.mubr.msk.f32.mxu0 %vm2362_vm0, %v2363_v1  ;;  %2252 = vmatpush3.bf16.msra.mxu0 %v2251_v6  ;;  %v1551_v6 = vand.u32 4294901760, %v1480_v5 }
  0x32   :  { %2082 = vmatmul.mubr.f32.vlgmr.msra.gmra.mrb[8].mxu1 %v2432_v12  ;;  %2253 = vmatprep.subr.bf16.mxu0 %v2361_v0 }
  0x33   :  { %2237 = vmatpush3.bf16.msra.mxu1 %v2227_v39  ;;  %2095 = vmatprep.mubr.msk.f32.mxu1 %vm2362_vm0, %v2363_v1 }
  0x34   :  { %2241 = vmatprep.subr.bf16.mxu1 %v2361_v0  ;;  %2309 = vset.pattern.permute.xlu0 %v2364_v63 }
  0x35   :  { %2255 = vmatpush3.bf16.msra.mxu0 %v2254_v11  ;;  %1476 = vperm.xlu0 %2309, %v40_v62  }
  0x36   :  { %2096 = vmatmul.mubr.f32.vlgmr.msra.gmra.mrb[10].mxu1 %v580_v26  ;;  %2256 = vmatprep.subr.bf16.mxu0 %v2361_v0 }
  0x37   :  { %2243 = vmatpush3.bf16.msra.mxu1 %v2227_v39  ;;  %2109 = vmatprep.mubr.msk.f32.mxu1 %vm2362_vm0, %v2363_v1 }
  0x38   :  { %2244 = vmatprep.subr.bf16.mxu1 %v2361_v0 }
  0x3a   :  { %2110 = vmatmul.mubr.f32.vlgmr.msra.gmra.mrb[12].mxu1 %v2432_v12  ;;  %v2497_v12 = vpack.c.bf16 %v992_v51, %v989_v50  ;;  %v1948_v50 = vld [vmem:[%s2579_s4] ss:$0 sm:$0xff]  ;;  %s2365_s4 = smov [#allocation5]  }
  0x3b   :  { %2120 = vmatprep.mubr.msk.f32.mxu1 %vm2362_vm0, %v2363_v1  ;;  %s1939_s23 = sshll.u32 %s2365_s4, 4  ;;  %s1940_s23 = int_to_ptr.vmem [resolvable:$true] %s1939_s23 }
  0x3c   :  { %2246 = vmatpush3.bf16.msra.mxu1 %v2497_v12  ;;  %s2332_s24 = scalar_lea.vmem %s1940_s23, 16  ;;  %s2336_s25 = scalar_lea.vmem %s1940_s23, 32 }
  0x3d   :  { %2247 = vmatprep.subr.bf16.mxu1 %v2361_v0  ;;  %p2333_p8 = scmp.ne.s32.totalorder %s1940_s23, %s2332_s24  ;;  %p2337_p9 = scmp.lt.s32.totalorder %s1940_s23, %s1940_s23 }
  0x3e   :  { %p2338_p10 = scmp.lt.s32.totalorder %s2336_s25, %s2332_s24 }
  0x40   :  { %2249 = vmatpush3.bf16.msra.mxu1 %v2503_v14  ;;  %p2339_p11 = por %p2338_p10, %p2337_p9 }
  0x41   :  { %2178 = vmatprep.subr.mxu1 %v2363_v1 }
  0x42   :  { %p2340_p12 = pnand %p2339_p11, %p2333_p8 }
  0xf1   :  { %v279_v18 = vpop.f32.mrb[0].mxu0 }
  0xf2   :  { %v2048_v19 = vpop.f32.mrb[1].mxu0 }
  0xf5   :  { %v122_v20 = vpop.f32.mrb[0].mxu1  ;;  %v431_v22 = vpop.f32.mrb[2].mxu0 }
  0xf6   :  { %v2034_v21 = vpop.f32.mrb[1].mxu1  ;;  %v2062_v23 = vpop.f32.mrb[3].mxu0 }
  0xf9   :  { %v203_v24 = vpop.f32.mrb[2].mxu1 }
  0xfa   :  { %v204_v25 = vadd.f32 %v203_v24, %v122_v20  ;;  %v2041_v26 = vpop.f32.mrb[3].mxu1 }
  0xfb   :  { %v584_v27 = vpop.f32.mrb[4].mxu0 }
  0xfc   :  { %v280_v28 = vadd.f32 %v279_v18, %v204_v25  ;;  %v2076_v29 = vpop.f32.mrb[5].mxu0 }
  0xfd   :  { %v354_v30 = vpop.f32.mrb[4].mxu1 }
  0xfe   :  { %v355_v31 = vadd.f32 %v354_v30, %v280_v28  ;;  %v2055_v32 = vpop.f32.mrb[5].mxu1 }
  0xff   :  { %v741_v33 = vpop.f32.mrb[6].mxu0 }
 0x100   :  { %v432_v34 = vadd.f32 %v431_v22, %v355_v31  ;;  %v2090_v35 = vpop.f32.mrb[7].mxu0  ;;  %v1477_v22 = vpop.permute.xlu0 %1476 }
 0x101   :  { %v504_v36 = vpop.f32.mrb[6].mxu1 }
 0x102   :  { %v505_v37 = vadd.f32 %v504_v36, %v432_v34  ;;  %v2069_v38 = vpop.f32.mrb[7].mxu1 }
 0x103   :  { %v893_v39 = vpop.f32.mrb[8].mxu0 }
 0x104   :  { %v585_v40 = vadd.f32 %v584_v27, %v505_v37  ;;  %v2104_v41 = vpop.f32.mrb[9].mxu0 }
 0x105   :  { %v665_v42 = vpop.f32.mrb[8].mxu1 }
 0x106   :  { %v666_v43 = vadd.f32 %v665_v42, %v585_v40  ;;  %v2083_v44 = vpop.f32.mrb[9].mxu1 }
 0x108   :  { %v742_v45 = vadd.f32 %v741_v33, %v666_v43 }
 0x109   :  { %v816_v46 = vpop.f32.mrb[10].mxu1 }
 0x10a   :  { %v817_v47 = vadd.f32 %v816_v46, %v742_v45  ;;  %v2097_v48 = vpop.f32.mrb[11].mxu1 }
 0x10c   :  { %v894_v49 = vadd.f32 %v893_v39, %v817_v47 }
 0x10d   :  { %v966_v51 = vpop.f32.mrb[12].mxu1 }
 0x10e   :  { %v967_v52 = vadd.f32 %v966_v51, %v894_v49  ;;  %v2111_v53 = vpop.f32.mrb[13].mxu1 }
 0x110   :  { %v974_v54 = vadd.f32 %v1948_v50, %v967_v52 }
 0x112   :  { %v975_v55 = vmax.f32 %v974_v54, 0.0 }
 0x114   :  { %v986_v56 = vsel %vm984_vm2, %v975_v55, 0 }
 0x115   :  { %v1057_v57 = vand.u32 4294901760, %v986_v56 }
 0x117   :  { %v1058_v58 = vsub.f32 %v986_v56, %v1057_v57  ;;  %2132 = vmatmul.mubr.f32.vlgmr.msra.gmra.mrb[10].mxu0 %v1057_v57 }
 0x118   :  { %2258 = vmatpush3.bf16.msra.mxu0 %v2257_v13  ;;  %2142 = vmatprep.mubr.msk.f32.mxu0 %vm2362_vm0, %v2363_v1 }
 0x119   :  { %2259 = vmatprep.subr.bf16.mxu0 %v2361_v0  ;;  %v1059_v59 = vand.u32 4294901760, %v1058_v58 }
 0x11b   :  { %v1060_v60 = vsub.f32 %v1058_v58, %v1059_v59 }
 0x11c   :  { %2261 = vmatpush3.bf16.msra.mxu0 %v2260_v15 }
 0x11d   :  { %v1061_v61 = vand.u32 4294901760, %v1060_v60  ;;  %2262 = vmatprep.subr.bf16.mxu0 %v2361_v0 }
 0x11f   :  { %2121 = vmatmul.mubr.f32.vlgmr.msra.gmra.mrb[14].mxu1 %v1061_v61  ;;  %2143 = vmatmul.mubr.f32.vlgmr.msra.gmra.mrb[10].mxu0 %v1058_v58 }
 0x120   :  { %2264 = vmatpush3.bf16.msra.mxu0 %v2497_v12  ;;  %2153 = vmatprep.mubr.msk.f32.mxu0 %vm2362_vm0, %v2363_v1 }
 0x121   :  { %2265 = vmatprep.subr.bf16.mxu0 %v2361_v0  ;;  %2180 = vmatprep.mubr.msk.f32.mxu1 %vm2362_vm0, %v2363_v1 }
 0x124   :  { %2267 = vmatpush3.bf16.msra.mxu0 %v2503_v14 }
 0x125   :  { %2268 = vmatprep.subr.bf16.mxu0 %v2361_v0 }
 0x127   :  { %2154 = vmatmul.mubr.f32.vlgmr.msra.gmra.mrb[10].mxu0 %v1059_v59 }
 0x128   :  { %2270 = vmatpush3.bf16.msra.mxu0 %v2269_v16  ;;  %2164 = vmatprep.mubr.msk.f32.mxu0 %vm2362_vm0, %v2363_v1 }
 0x129   :  { %2271 = vmatprep.subr.bf16.mxu0 %v2361_v0 }
 0x12c   :  { %2273 = vmatpush3.bf16.msra.mxu0 %v2509_v17 }
 0x12d   :  { %2274 = vmatprep.subr.bf16.mxu0 %v2361_v0 }
 0x12f   :  { %2165 = vmatmul.mubr.f32.vlgmr.msra.gmra.mrb[10].mxu0 %v1057_v57 }
 0x130   :  { %2276 = vmatpush3.bf16.msra.mxu0 %v2497_v12  ;;  %2175 = vmatprep.mubr.msk.f32.mxu0 %vm2362_vm0, %v2363_v1 }
 0x131   :  { %2277 = vmatprep.subr.bf16.mxu0 %v2361_v0  ;;  %v1552_v0 = vsub.f32 %v1480_v5, %v1551_v6 }
 0x133   :  { %v1553_v9 = vand.u32 4294901760, %v1552_v0 }
 0x134   :  { %2279 = vmatpush3.bf16.msra.mxu0 %v2503_v14 }
 0x135   :  { %v1554_v14 = vsub.f32 %v1552_v0, %v1553_v9 }
 0x137   :  { %2176 = vmatmul.mubr.f32.vlgmr.msra.gmra.mrb[10].mxu0 %v1057_v57  ;;  %v1555_v17 = vand.u32 4294901760, %v1554_v14 }
 0x1f2   :  { %v1063_v2 = vpop.f32.mrb[14].mxu1 }
 0x1f3   :  { %v2122_v3 = vpop.f32.mrb[15].mxu1  ;;  %v1064_v8 = vadd.f32 %v1949_v7, %v1063_v2 }
 0x20a   :  { %v1469_v10 = vpop.f32.mrb[10].mxu0 }
 0x20b   :  { %v2281_v11 = vadd.f32 %v1469_v10, %v1064_v8  ;;  %v2177_v12 = vpop.f32.mrb[11].mxu0 }
 0x20d   :  { %v1473_v13 = vmax.f32 %v2281_v11, 0.0 }
 0x20f   :  { %v1483_v15 = vsel %vm984_vm2, %v1473_v13, 0 }
 0x210   :  { %v1486_v16 = vand.u32 4294901760, %v1483_v15 }
 0x212   :  { %v1563_v18 = vsub.f32 %v1483_v15, %v1486_v16  ;;  %2179 = vmatpush3.xpose.msra.mxu1 %v1486_v16 }
 0x213   :  { %2183 = vmatprep.subr.mxu1 %v2363_v1 }
 0x214   :  { %v1564_v19 = vand.u32 4294901760, %v1563_v18 }
 0x215   :  { %2181 = vmatmul.mubr.f32.vlgmr.msra.gmra.mrb[16].mxu1 %v1555_v17 }
 0x216   :  { %v1565_v20 = vsub.f32 %v1563_v18, %v1564_v19  ;;  %2185 = vmatprep.mubr.msk.f32.mxu1 %vm2362_vm0, %v2363_v1 }
 0x218   :  { %v1566_v21 = vand.u32 4294901760, %v1565_v20 }
 0x21a   :  { %2184 = vmatpush3.xpose.msra.mxu1 %v1566_v21 }
 0x21b   :  { %2188 = vmatprep.subr.mxu1 %v2363_v1 }
 0x21d   :  { %2186 = vmatmul.mubr.f32.vlgmr.msra.gmra.mrb[16].mxu1 %v1551_v6 }
 0x21e   :  { %2189 = vmatpush3.xpose.msra.mxu1 %v1563_v18  ;;  %2190 = vmatprep.mubr.msk.f32.mxu1 %vm2362_vm0, %v2363_v1 }
 0x21f   :  { %2193 = vmatprep.subr.mxu1 %v2363_v1 }
 0x225   :  { %2191 = vmatmul.mubr.f32.vlgmr.msra.gmra.mrb[16].mxu1 %v1552_v0 }
 0x226   :  { %2194 = vmatpush3.xpose.msra.mxu1 %v1486_v16  ;;  %2195 = vmatprep.mubr.msk.f32.mxu1 %vm2362_vm0, %v2363_v1 }
 0x227   :  { %2198 = vmatprep.subr.mxu1 %v2363_v1 }
 0x22d   :  { %2196 = vmatmul.mubr.f32.vlgmr.msra.gmra.mrb[16].mxu1 %v1553_v9 }
 0x22e   :  { %2199 = vmatpush3.xpose.msra.mxu1 %v1564_v19  ;;  %2200 = vmatprep.mubr.msk.f32.mxu1 %vm2362_vm0, %v2363_v1 }
 0x22f   :  { %2203 = vmatprep.subr.mxu1 %v2363_v1 }
 0x235   :  { %2201 = vmatmul.mubr.f32.vlgmr.msra.gmra.mrb[16].mxu1 %v1551_v6 }
 0x236   :  { %2204 = vmatpush3.xpose.msra.mxu1 %v1486_v16  ;;  %2205 = vmatprep.mubr.msk.f32.mxu1 %vm2362_vm0, %v2363_v1 }
 0x23d   :  { %2206 = vmatmul.mubr.f32.vlgmr.msra.gmra.mrb[16].mxu1 %v1551_v6 }
 0x310   :  { %v1927_v23 = vpop.f32.mrb[16].mxu1 }
 0x311   :  { %v2282_v24 = vadd.f32 %v1927_v23, %v1477_v22  ;;  %v2207_v25 = vpop.f32.mrb[17].mxu1 }
 0x313   :  { %1932 = vst.msk [vmem:[#allocation5] sm:$0x1] %vm1931_vm3, %v2282_v24 }
 0x314   :  { %2343 = shalt.err (!%p2340_p12)
}
 0x315   :  { %s2344_s28 = scalar_lea.hbm %s2580_s5, 16 }
 0x316   :  { %p2345_p13 = scmp.ne.s32.totalorder %s2580_s5, %s2344_s28  ;;  %p2348_p0 = scmp.lt.u32.totalorder %s2344_s28, %s2580_s5 }
 0x318   :  { %p2350_p1 = pnand %p2348_p0, %p2345_p13 }
 0x31a   :  { %2353 = shalt.err (!%p2350_p1)
}
 0x31b   :  { %1942 = dma.vmem_to_hbm [thread:$0]  %s1940_s23, 16, %s2580_s5, [#allocation4]  }
 0x31c   :  { %2356 = dma.done.wait [#allocation4], 16  }
 0x31d   :  { %2357 = vsyncadd [#allocation4], 4294967280 }
 0x31e   :  { %1946 = vsyncpa [#allocation3], 1 }
 0x31f   :  { %1947 = vsyncpa [#allocation4], 1 }

</bundles_post_ra>
